<compile_context>
chip_gen: v7x
topology: tpu7x:2x2x1
jax: 0.10.0
libtpu: 0.0.40
codegen_flags: <defaults>
</compile_context>

<pallas_src>
import functools

import jax
import jax.numpy as jnp
from jax import lax
from jax.experimental import pallas as pl
from jax.experimental.pallas import tpu as pltpu


def _round_up(x, m):
    return (x + m - 1) // m * m


def _vmem_capacity_bytes():
    try:
        cap = getattr(pltpu.get_tpu_info(), "vmem_capacity_bytes", None)
        if cap:
            return int(cap)
    except Exception:
        pass
    return 64 * 1024 * 1024  # conservative fallback (v7x per-TensorCore)


def _accum_and_finalize(lhs, rhs, g_ref, *, k, nk, scale, k_total, tk):
    """Zero-init at k==0, accumulate lhs @ rhs^T into g_ref, scale at k==nk-1."""

    @pl.when(k == 0)
    def _():
        g_ref[...] = jnp.zeros_like(g_ref)

    def accum(a, b):
        g_ref[...] += lax.dot_general(
            a, b, (((1,), (1,)), ((), ())),
            preferred_element_type=jnp.float32)

    if k_total % tk != 0:
        # Ragged K tail: the mask only runs on the last reduction step; every
        # other step takes the unmasked path.  Both operands are masked so
        # unspecified pad contents (possibly NaN/Inf) cannot leak via 0*Inf.
        @pl.when(k < nk - 1)
        def _():
            accum(lhs, rhs)

        @pl.when(k == nk - 1)
        def _():
            base = k * tk
            col_l = lax.broadcasted_iota(jnp.int32, lhs.shape, 1) + base
            lhs_m = jnp.where(col_l < k_total, lhs, jnp.zeros_like(lhs))
            if rhs is lhs:
                rhs_m = lhs_m
            else:
                col_r = lax.broadcasted_iota(jnp.int32, rhs.shape, 1) + base
                rhs_m = jnp.where(col_r < k_total, rhs, jnp.zeros_like(rhs))
            accum(lhs_m, rhs_m)
    else:
        accum(lhs, rhs)

    @pl.when(k == nk - 1)
    def _():
        g_ref[...] = g_ref[...] * jnp.float32(scale)


def _gram_kernel(f_ref, g_ref, *, scale, k_total, tk):
    f = f_ref[...]
    _accum_and_finalize(f, f, g_ref,
                        k=pl.program_id(0), nk=pl.num_programs(0),
                        scale=scale, k_total=k_total, tk=tk)


def _gram_kernel_row_split(lhs_ref, rhs_ref, g_ref, *, scale, k_total, tk):
    _accum_and_finalize(lhs_ref[...], rhs_ref[...], g_ref,
                        k=pl.program_id(1), nk=pl.num_programs(1),
                        scale=scale, k_total=k_total, tk=tk)


def style_loss_forward(x, target_scaled, weight, *,
                       row_block=None, tk_override=None,
                       step_bytes_target=4 * 1024 * 1024):
    """StyleLoss.forward.

    Returns (out, G, loss):
      out  == x                       (self.out = x.clone())
      G    == gram(x) * weight        (self.G, already scaled by weight)
      loss == mean((G - target)^2)    (self.loss; target == target_raw * weight)
    """
    a, b, c, d = x.shape
    M = a * b
    K = c * d
    scale = float(weight) / float(a * b * c * d)

    f = x.reshape(M, K)  # contiguous view of the feature map; no data movement
    itemsize = jnp.dtype(x.dtype).itemsize

    # Generation-aware VMEM budget (~3/4 of physical: ~48 MiB on v7x's 64 MiB,
    # ~96 MiB on v5e/v6e's 128 MiB), set explicitly via vmem_limit_bytes
    # instead of relying on the scoped default.
    vmem_budget = (_vmem_capacity_bytes() * 3) // 4

    # Row split: only for large, compute-bound Grams (v7x megacore sharding +
    # a smaller resident accumulator); costs one extra read of F per row block
    # as the RHS, so small / HBM-bound M keeps the single-block path.
    if row_block is None:
        row_block = 256 if M >= 512 else M
    tm = min(int(row_block), M)
    if tm < M:
        tm = max(8, (tm // 8) * 8)  # sublane alignment for the row tile
    use_split = tm < M
    nm = pl.cdiv(M, tm)

    # Resident bytes independent of tk: the G output block, accumulated in
    # place (constant index map over the reduction axis => single resident
    # buffer).  Everything else streams as double-buffered (rows, tk) F tiles.
    g_block_bytes = (tm if use_split else M) * M * 4
    rows_streamed = (tm + M) if use_split else M
    per_col_bytes = 2 * rows_streamed * itemsize  # double buffer per K column

    if tk_override is not None:
        tk = int(tk_override)
    else:
        # Aim for >= ~step_bytes_target of F per grid step, then clamp by the
        # VMEM budget (which now accounts for the resident G block too).
        tk_want = _round_up(
            max(1, step_bytes_target // max(1, rows_streamed * itemsize)), 128)
        avail = max(0, vmem_budget - g_block_bytes)
        tk_cap = max(128, (avail // max(1, per_col_bytes)) // 128 * 128)
        tk = min(tk_want, tk_cap)
        if tk >= K:
            tk = K  # single reduction step; full-K block (== full array dim)
    nk = pl.cdiv(K, tk)

    kernel_kw = dict(scale=scale, k_total=K, tk=tk)
    # NOTE: weight/denom are baked in statically (style-transfer layer weights
    # are fixed); pass them via SMEM scalars instead if they vary at runtime.

    f_bytes = M * K * itemsize
    cost = pl.CostEstimate(
        flops=2 * M * M * K,
        transcendentals=0,
        bytes_accessed=(f_bytes * (1 + nm) if use_split else f_bytes) + M * M * 4)

    if use_split:
        grid = (nm, nk)
        kernel = functools.partial(_gram_kernel_row_split, **kernel_kw)
        in_specs = [
            pl.BlockSpec((tm, tk), lambda i, k: (i, k)),  # F row tile (LHS)
            pl.BlockSpec((M, tk), lambda i, k: (0, k)),   # all rows of F (RHS)
        ]
        out_specs = pl.BlockSpec((tm, M), lambda i, k: (i, 0))
        operands = (f, f)
        dims = ("parallel", "arbitrary")
    else:
        grid = (nk,)
        kernel = functools.partial(_gram_kernel, **kernel_kw)
        in_specs = [pl.BlockSpec((M, tk), lambda k: (0, k))]
        out_specs = pl.BlockSpec((M, M), lambda k: (0, 0))
        operands = (f,)
        dims = ("arbitrary",)
    # TODO(synk): for very large compute-bound M, the A@A^T dot_general may
    # lower with a per-step RHS transpose (check pl.lower_as_mlir) and the Gram
    # symmetry could halve MXU work; not needed for typical style-layer sizes.

    g_scaled = pl.pallas_call(
        kernel,
        out_shape=jax.ShapeDtypeStruct((M, M), jnp.float32),
        grid_spec=pltpu.PrefetchScalarGridSpec(
            num_scalar_prefetch=0,
            grid=grid,
            in_specs=in_specs,
            out_specs=out_specs,
        ),
        compiler_params=pltpu.CompilerParams(
            dimension_semantics=dims,
            vmem_limit_bytes=int(vmem_budget)),
        cost_estimate=cost,
    )(*operands)

    # MSE epilogue in plain JAX: the (M, M) elementwise + reduce is trivially
    # fused by XLA and keeps the target block / serial cross-lane reduce off
    # the kernel's critical path and out of its VMEM budget.
    loss = jnp.mean(jnp.square(g_scaled - target_scaled.astype(jnp.float32)))

    out = x  # self.out = x.clone(); JAX arrays are immutable, identity suffices
    return out, g_scaled, loss


if __name__ == "__main__":
    key = jax.random.PRNGKey(0)
    k_x, k_s = jax.random.split(key)

    def gram_ref(y):
        na, nb, nc, nd = y.shape
        fr = y.reshape(na * nb, nc * nd).astype(jnp.float32)
        return (fr @ fr.T) / (na * nb * nc * nd)

    weight = 0.75

    # --- Case 1: small NCHW feature map, single-step reduction path. ---
    B, C, H, W = 2, 4, 16, 16
    x = jax.random.normal(k_x, (B, C, H, W), dtype=jnp.float32)
    style = jax.random.normal(k_s, (B, C, H, W), dtype=jnp.float32)
    # __init__: target passed to StyleLoss is the Gram of the style features;
    # self.target = target.detach() * weight.
    target_scaled = gram_ref(style) * weight

    out, G, loss = style_loss_forward(x, target_scaled, weight)
    out, G, loss = jax.block_until_ready((out, G, loss))

    G_ref = gram_ref(x) * weight
    loss_ref = jnp.mean((G_ref - target_scaled) ** 2)
    assert jnp.allclose(G, G_ref, rtol=1e-5, atol=1e-5), (G, G_ref)
    assert jnp.allclose(loss, loss_ref, rtol=1e-5, atol=1e-5), (loss, loss_ref)
    assert jnp.array_equal(out, x)

    # --- Case 2: ragged K + multi-step reduction (K=300, tk=128 -> 3 steps,
    #     mask active only on the last step). ---
    x2 = jax.random.normal(jax.random.PRNGKey(1), (1, 5, 10, 30), jnp.float32)
    s2 = jax.random.normal(jax.random.PRNGKey(2), (1, 5, 10, 30), jnp.float32)
    t2 = gram_ref(s2) * weight
    _, G2, loss2 = style_loss_forward(x2, t2, weight, tk_override=128)
    G2, loss2 = jax.block_until_ready((G2, loss2))
    G2_ref = gram_ref(x2) * weight
    loss2_ref = jnp.mean((G2_ref - t2) ** 2)
    assert jnp.allclose(G2, G2_ref, rtol=1e-5, atol=1e-5), (G2, G2_ref)
    assert jnp.allclose(loss2, loss2_ref, rtol=1e-5, atol=1e-5), (loss2, loss2_ref)

    # --- Case 3: exercise the row-split ("parallel" x "arbitrary") path that
    #     large / compute-bound Grams use, forced here at a small shape
    #     (M=16, tm=8, K=360, tk=128 -> grid (2, 3) with a ragged tail). ---
    x3 = jax.random.normal(jax.random.PRNGKey(3), (2, 8, 18, 20), jnp.float32)
    s3 = jax.random.normal(jax.random.PRNGKey(4), (2, 8, 18, 20), jnp.float32)
    t3 = gram_ref(s3) * weight
    _, G3, loss3 = style_loss_forward(x3, t3, weight, row_block=8, tk_override=128)
    G3, loss3 = jax.block_until_ready((G3, loss3))
    G3_ref = gram_ref(x3) * weight
    loss3_ref = jnp.mean((G3_ref - t3) ** 2)
    assert jnp.allclose(G3, G3_ref, rtol=1e-5, atol=1e-5), (G3, G3_ref)
    assert jnp.allclose(loss3, loss3_ref, rtol=1e-5, atol=1e-5), (loss3, loss3_ref)

    # TODO(synk): backward() (autograd graph retention) is training-time only
    # and not implemented here; only the forward pass is translated.
    print("KERNEL_OK")
</pallas_src>

<mosaic_0001>
module attributes {stable_mosaic.version = 11 : i64} {
  func.func @_gram_kernel(%arg0: i32, %arg1: memref<8x256xf32, #tpu.memory_space<vmem>>, %arg2: memref<8x8xf32, #tpu.memory_space<vmem>>) attributes {dimension_semantics = [#tpu.dimension_semantics<arbitrary>], iteration_bounds = array<i64: 1>, scalar_prefetch = 0 : i64, scratch_operands = 0 : i64, tpu.core_type = #tpu.core_type<tc>, window_params = [{transform_indices = @transform_0, window_bounds = array<i64: 8, 256>}, {pipeline_mode = #tpu.pipeline_mode<synchronous>, transform_indices = @transform_1, window_bounds = array<i64: 8, 8>}]} {
    %c0 = arith.constant 0 : index
    %c0_0 = arith.constant 0 : index
    %0 = vector.load %arg1[%c0, %c0_0] : memref<8x256xf32, #tpu.memory_space<vmem>>, vector<8x256xf32>
    %c0_i32 = arith.constant 0 : i32
    %1 = arith.cmpi eq, %arg0, %c0_i32 : i32
    %2 = arith.extui %1 : i1 to i32
    %c0_i32_1 = arith.constant 0 : i32
    %3 = arith.cmpi ne, %2, %c0_i32_1 : i32
    scf.if %3 {
      %cst_8 = arith.constant 0.000000e+00 : f32
      %11 = vector.broadcast %cst_8 : f32 to vector<8x8xf32>
      %c0_9 = arith.constant 0 : index
      %c0_10 = arith.constant 0 : index
      %12 = vector.load %arg2[%c0_9, %c0_10] : memref<8x8xf32, #tpu.memory_space<vmem>>, vector<8x8xf32>
      tpu.vector_store %arg2[%c0_9, %c0_10], %11 {strides = array<i32>} : memref<8x8xf32, #tpu.memory_space<vmem>>, vector<8x8xf32>,
    } else {
    }
    %c0_2 = arith.constant 0 : index
    %c0_3 = arith.constant 0 : index
    %4 = vector.load %arg2[%c0_2, %c0_3] : memref<8x8xf32, #tpu.memory_space<vmem>>, vector<8x8xf32>
    %cst = arith.constant dense<0.000000e+00> : vector<8x8xf32>
    %5 = tpu.matmul %0, %0, %cst {dimension_numbers = #tpu.dot_dimension_numbers<[1], [1], [0], [0], [0, 0, 1, 0], [], []>} : vector<8x256xf32>, vector<8x256xf32>, vector<8x8xf32> -> vector<8x8xf32>
    %6 = arith.addf %4, %5 : vector<8x8xf32>
    %c0_4 = arith.constant 0 : index
    %c0_5 = arith.constant 0 : index
    %7 = vector.load %arg2[%c0_4, %c0_5] : memref<8x8xf32, #tpu.memory_space<vmem>>, vector<8x8xf32>
    tpu.vector_store %arg2[%c0_4, %c0_5], %6 {strides = array<i32>} : memref<8x8xf32, #tpu.memory_space<vmem>>, vector<8x8xf32>,
    %c0_i32_6 = arith.constant 0 : i32
    %8 = arith.cmpi eq, %arg0, %c0_i32_6 : i32
    %9 = arith.extui %8 : i1 to i32
    %c0_i32_7 = arith.constant 0 : i32
    %10 = arith.cmpi ne, %9, %c0_i32_7 : i32
    scf.if %10 {
      %c0_8 = arith.constant 0 : index
      %c0_9 = arith.constant 0 : index
      %11 = vector.load %arg2[%c0_8, %c0_9] : memref<8x8xf32, #tpu.memory_space<vmem>>, vector<8x8xf32>
      %cst_10 = arith.constant 3.66210938E-4 : f32
      %12 = vector.broadcast %cst_10 : f32 to vector<8x8xf32>
      %13 = arith.mulf %11, %12 : vector<8x8xf32>
      %c0_11 = arith.constant 0 : index
      %c0_12 = arith.constant 0 : index
      %14 = vector.load %arg2[%c0_11, %c0_12] : memref<8x8xf32, #tpu.memory_space<vmem>>, vector<8x8xf32>
      tpu.vector_store %arg2[%c0_11, %c0_12], %13 {strides = array<i32>} : memref<8x8xf32, #tpu.memory_space<vmem>>, vector<8x8xf32>,
    } else {
    }
    return
  }
  func.func @transform_0(%arg0: i32) -> (i32, i32) {
    %c0_i32 = arith.constant 0 : i32
    %c0_i32_0 = arith.constant 0 : i32
    return %c0_i32, %arg0 : i32, i32
  }
  func.func @transform_1(%arg0: i32) -> (i32, i32) {
    %c0_i32 = arith.constant 0 : i32
    %c0_i32_0 = arith.constant 0 : i32
    %c0_i32_1 = arith.constant 0 : i32
    return %c0_i32, %c0_i32_0 : i32, i32
  }
}

</mosaic_0001>

<bundles_post_ra>
// kernel: tpu_custom_call.1
= control target key start
LH: loop header
LB: loop body
LE: loop exit
PB: predicated region body
PF: predicated region fallthrough
CT: control target
= control target key end

     0   :  { %6 = vsyncpa [#allocation3], 0  ;;  %s215_s0 = inlined_call_operand.hbm [shape: f32[8,256], index: 0, kind: input, shape index: {}]   ;;  %s216_s1 = inlined_call_operand.hbm [shape: f32[8,8], index: 1, kind: output, shape index: {}]  }
   0x1   :  { %7 = vsyncpa [#allocation4], 0  ;;  %s175_s6 = smov [#allocation2]   ;;  %s127_s10 = scalar_lea.hbm %s215_s0, 256 }
   0x2   :  { %s14_s7 = sshll.u32 %s175_s6, 4  ;;  %p128_p0 = scmp.ne.s32.totalorder %s215_s0, %s127_s10  ;;  %s15_s7 = int_to_ptr.vmem [resolvable:$true] %s14_s7 }
   0x3   :  { %p131_p1 = scmp.lt.u32.totalorder %s127_s10, %s215_s0 }
   0x5   :  { %p133_p2 = pnand %p131_p1, %p128_p0 }
   0x7   :  { %136 = shalt.err (!%p133_p2)
}
   0x8   :  { %s137_s15 = scalar_lea.vmem %s15_s7, 256  ;;  %p142_p4 = scmp.lt.s32.totalorder %s15_s7, %s15_s7 }
   0x9   :  { %p138_p3 = scmp.ne.s32.totalorder %s15_s7, %s137_s15  ;;  %p143_p5 = scmp.lt.s32.totalorder %s137_s15, %s137_s15 }
   0xb   :  { %p144_p6 = por %p143_p5, %p142_p4 }
   0xd   :  { %p145_p7 = pnand %p144_p6, %p138_p3 }
   0xf   :  { %148 = shalt.err (!%p145_p7)
}
  0x10   :  { %17 = dma.hbm_to_vmem [thread:$0]  %s215_s0, 256, %s15_s7, [#allocation3]  }
  0x11   :  { %171 = dma.done.wait [#allocation3], 256  }
  0x12   :  { %172 = vsyncadd [#allocation3], 4294967040  ;;  %vm27_vm0 = vcmask 64512   ;;  %v176_v0 = vmov 0.0   ;;  %v22_v1 = vld [vmem:[#allocation2 + $0x8] sm:$0xff]  ;;  %v21_v2 = vld [vmem:[#allocation2] sm:$0xff] }
  0x13   :  { %28 = vst.msk [vmem:[#allocation5] sm:$0xff] %vm27_vm0, %v176_v0  ;;  %30 = vmatprep.subr.mxu0 %v22_v1  ;;  %94 = vmatprep.mubr.f32.mxu0 %v22_v1  ;;  %s177_s18 = smov [#allocation5]  }
  0x14   :  { %31 = vmatpush1.xpose.msra.mxu0 %v21_v2  ;;  %s115_s0 = sshll.u32 %s177_s18, 4  ;;  %s116_s0 = int_to_ptr.vmem [resolvable:$true] %s115_s0 }
  0x15   :  { %s149_s19 = scalar_lea.vmem %s116_s0, 128  ;;  %p154_p9 = scmp.lt.s32.totalorder %s116_s0, %s116_s0 }
  0x16   :  { %p150_p8 = scmp.ne.s32.totalorder %s116_s0, %s149_s19  ;;  %p155_p10 = scmp.lt.s32.totalorder %s149_s19, %s149_s19 }
  0x17   :  { %95 = vmatmul.mubr.f32.vlgmr.msra.gmra.mrb[0].mxu0 %v21_v2 }
  0x18   :  { %p156_p11 = por %p155_p10, %p154_p9 }
  0x1a   :  { %v29_v3 = vld [vmem:[#allocation5] sm:$0xff]  ;;  %p157_p12 = pnand %p156_p11, %p150_p8 }
  0xea   :  { %v96_v4 = vpop.f32.mrb[0].mxu0 }
  0xeb   :  { %v100_v5 = vadd.f32 %v96_v4, %v29_v3  ;;  %v98_v6 = vpop.f32.mrb[1].mxu0 }
  0xed   :  { %102 = vst.msk [vmem:[#allocation5] sm:$0xff] %vm27_vm0, %v100_v5 }
  0xf4   :  { %v106_v7 = vld [vmem:[#allocation5] sm:$0xff] }
  0xf5   :  { %v107_v8 = vmul.f32 0.00036621094, %v106_v7 }
  0xf7   :  { %108 = vst.msk [vmem:[#allocation5] sm:$0xff] %vm27_vm0, %v107_v8 }
  0xf8   :  { %160 = shalt.err (!%p157_p12)
}
  0xf9   :  { %s161_s22 = scalar_lea.hbm %s216_s1, 128 }
  0xfa   :  { %p162_p13 = scmp.ne.s32.totalorder %s216_s1, %s161_s22  ;;  %p165_p0 = scmp.lt.u32.totalorder %s161_s22, %s216_s1 }
  0xfc   :  { %p167_p1 = pnand %p165_p0, %p162_p13 }
  0xfe   :  { %170 = shalt.err (!%p167_p1)
}
  0xff   :  { %118 = dma.vmem_to_hbm [thread:$0]  %s116_s0, 128, %s216_s1, [#allocation4]  }
 0x100   :  { %173 = dma.done.wait [#allocation4], 128  }
 0x101   :  { %174 = vsyncadd [#allocation4], 4294967168 }
 0x102   :  { %122 = vsyncpa [#allocation3], 1 }
 0x103   :  { %123 = vsyncpa [#allocation4], 1 }

</bundles_post_ra>
